<compile_context>
chip_gen: v7x
topology: tpu7x:2x2x1
jax: 0.10.0
libtpu: 0.0.40
codegen_flags: <defaults>
</compile_context>

<pallas_src>
import functools

import jax
import jax.numpy as jnp
from jax.experimental import pallas as pl
from jax.experimental.pallas import tpu as pltpu


def _round_up(a, m):
    return (a + m - 1) // m * m


def _cdiv(a, b):
    return (a + b - 1) // b


def _vmem_cap_bytes():
    """Per-generation VMEM cap (leave ~25% headroom for compiler scratch)."""
    try:
        info = pltpu.get_tpu_info()
        vmem = int(getattr(info, "vmem_capacity_bytes", 0)) or (64 * 2**20)
    except Exception:
        vmem = 64 * 2**20          # conservative: v7x per-TensorCore VMEM
    return int(0.75 * vmem)


def _vmem_need_bytes(TB, NI_P, NO_P, weight_bufs):
    """Estimated VMEM use: weights + pipelined x/out tiles + kernel temporaries."""
    w = weight_bufs * (2 * NI_P * (NI_P + NO_P)      # [W1|Wid] bf16
                       + 2 * NI_P * NO_P             # W2 bf16
                       + 4 * (NI_P + NO_P)           # [b1|bid] f32
                       + 4 * NO_P)                   # b2 f32
    io = 2 * (2 * TB * NI_P + 4 * TB * NO_P)         # double-buffered x(bf16)/out(f32)
    tmp = (4 * TB * (NI_P + NO_P)                    # hr (f32)
           + 4 * TB * NI_P + 2 * TB * NI_P           # h (f32) + h (bf16 MXU operand)
           + 4 * 4 * TB * NO_P)                      # r, y, z, zc (f32)
    return w + io + tmp


def _res_layer_kernel(scal_ref, x_ref, wcat_ref, bcat_ref, w2_ref, b2_ref, o_ref,
                      *, ni_p, no, d):
    xb = x_ref[...]                                   # (TB, NI_P) bf16

    # Fused lin1 + idconv: one MXU pass over the shared LHS x (bf16 in, f32 acc).
    hr = jnp.dot(xb, wcat_ref[...], preferred_element_type=jnp.float32) + bcat_ref[...]
    h = jnp.maximum(hr[:, :ni_p], 0.0)   # lin1 -> ReLU (act1); dropout is a no-op
    r = hr[:, ni_p:]                     # idconv residual branch (no activation)

    # lin2 -> ReLU (act2); bf16 MXU operands, f32 accumulation + f32 bias.
    y = jnp.dot(h.astype(jnp.bfloat16), w2_ref[...],
                preferred_element_type=jnp.float32) + b2_ref[...]
    y = jnp.maximum(y, 0.0)

    z = r + y                            # (TB, NO_P) f32; padded lanes are exactly 0.0

    # LayerNorm over the real `no` columns.  Mean: padded lanes contribute 0 to
    # the sum.  Variance: two-pass (centered) with a lane mask — numerically
    # robust when |mean| >> std (post-ReLU), unbiased (N-1) divisor to match
    # torch.var default.  This runs on VPU/XLU slack under the MXU.
    s = jnp.sum(z, axis=-1, keepdims=True)
    m = s * (1.0 / d)
    lane = jax.lax.broadcasted_iota(jnp.int32, z.shape, 1)
    zc = jnp.where(lane < no, z - m, 0.0)
    v = jnp.sum(zc * zc, axis=-1, keepdims=True) * (1.0 / (d - 1.0))
    inv = jax.lax.rsqrt(v + 1e-5)        # EUP rsqrt instead of a VPU divide

    mult = scal_ref[0]                   # scalar LayerNorm gain (SMEM)
    add = scal_ref[1]                    # scalar LayerNorm bias (SMEM)
    o_ref[...] = (zc * inv * mult + add).astype(o_ref.dtype)


def prepare_res_layer_params(w1, b1, w2, b2, wid, bid, mult, add):
    """One-time packing/padding of parameters (hoisted off the per-call path).

    W's are (in, out); biases 1-D; mult/add scalars.  Weights are stored padded
    to lane multiples and pre-cast to bf16 (MXU-native); biases stay f32.
    """
    ni = w1.shape[0]
    no = w2.shape[1]
    assert no > 1, "unbiased variance (N-1) requires no > 1"
    f32, bf16 = jnp.float32, jnp.bfloat16

    NI_P = _round_up(ni, 128)
    NO_P = _round_up(no, 128)

    w1p = jnp.zeros((NI_P, NI_P), bf16).at[:ni, :ni].set(w1.astype(bf16))
    widp = jnp.zeros((NI_P, NO_P), bf16).at[:ni, :no].set(wid.astype(bf16))
    w_cat = jnp.concatenate([w1p, widp], axis=1)                    # (NI_P, NI_P+NO_P) bf16
    b_cat = (jnp.zeros((1, NI_P + NO_P), f32)
             .at[0, :ni].set(jnp.reshape(b1, (-1,)).astype(f32))
             .at[0, NI_P:NI_P + no].set(jnp.reshape(bid, (-1,)).astype(f32)))
    w2p = jnp.zeros((NI_P, NO_P), bf16).at[:ni, :no].set(w2.astype(bf16))
    b2p = jnp.zeros((1, NO_P), f32).at[0, :no].set(jnp.reshape(b2, (-1,)).astype(f32))
    scal = jnp.asarray([mult, add], dtype=f32)                      # SMEM scalars

    return dict(ni=ni, no=no, NI_P=NI_P, NO_P=NO_P,
                scal=scal, w_cat=w_cat, b_cat=b_cat, w2p=w2p, b2p=b2p)


def res_layer(x, params):
    """Apply the fused ResLayer forward to x:(B, ni) f32 using pre-packed params."""
    B, ni = x.shape
    assert ni == params["ni"]
    no, NI_P, NO_P = params["no"], params["NI_P"], params["NO_P"]
    f32, bf16 = jnp.float32, jnp.bfloat16

    # --- Balanced batch tiling --------------------------------------------
    # * no near-empty trailing tile (TB = round_up(ceil(B / n_tiles), 8))
    # * >= 2 tiles when B >= 256 so the "parallel" axis shards across both
    #   TensorCores on v7x (each tile still has >= 128 MXU rows)
    # * shrink TB (more tiles) if the VMEM budget would exceed the per-gen cap.
    TB_MAX = 512
    cap = _vmem_cap_bytes()
    min_tiles = 2 if B >= 256 else 1
    n_req = max(_cdiv(B, TB_MAX), min_tiles)
    while True:
        TB = _round_up(_cdiv(B, n_req), 8)
        B_P = _round_up(B, TB)
        n_tiles = B_P // TB
        need = _vmem_need_bytes(TB, NI_P, NO_P, weight_bufs=2)   # conservative
        if need <= cap or TB <= 8:
            break
        n_req += 1

    vmem_limit = int(min(cap, max(8 * 2**20, int(1.3 * need))))

    # x tile streamed as bf16 (MXU-native anyway) -> half the input DMA bytes.
    xp = jnp.zeros((B_P, NI_P), bf16).at[:B, :ni].set(x.astype(bf16))

    cost = pl.CostEstimate(
        flops=2 * B_P * NI_P * (NI_P + NO_P) + 2 * B_P * NI_P * NO_P,
        transcendentals=B_P,
        bytes_accessed=(2 * B_P * NI_P
                        + 2 * (NI_P * (NI_P + NO_P) + NI_P * NO_P)
                        + 4 * ((NI_P + NO_P) + NO_P)
                        + 4 * B_P * NO_P),
    )

    kernel = functools.partial(_res_layer_kernel, ni_p=NI_P, no=no, d=float(no))

    def build(single_buffer_weights):
        def w_spec(shape):
            if single_buffer_weights:
                # Grid-invariant blocks: one buffer is enough (halves resident VMEM).
                return pl.BlockSpec(shape, lambda i: (0, 0),
                                    pipeline_mode=pl.Buffered(1))
            return pl.BlockSpec(shape, lambda i: (0, 0))

        return pl.pallas_call(
            kernel,
            out_shape=jax.ShapeDtypeStruct((B_P, NO_P), f32),
            grid=(n_tiles,),
            in_specs=[
                pl.BlockSpec(memory_space=pltpu.MemorySpace.SMEM),   # [mult, add]
                pl.BlockSpec((TB, NI_P), lambda i: (i, 0)),          # x tile (pipelined)
                w_spec((NI_P, NI_P + NO_P)),                         # [W1 | Wid] resident
                w_spec((1, NI_P + NO_P)),                            # [b1 | bid]
                w_spec((NI_P, NO_P)),                                # W2 resident
                w_spec((1, NO_P)),                                   # b2
            ],
            out_specs=pl.BlockSpec((TB, NO_P), lambda i: (i, 0)),
            compiler_params=pltpu.CompilerParams(
                dimension_semantics=("parallel",),
                vmem_limit_bytes=vmem_limit,
            ),
            cost_estimate=cost,
        )

    args = (params["scal"], xp, params["w_cat"], params["b_cat"],
            params["w2p"], params["b2p"])
    try:
        out_p = build(single_buffer_weights=True)(*args)
    except Exception:
        # Compatibility fallback: installed Pallas doesn't support
        # pipeline_mode=pl.Buffered(1) on grid BlockSpecs.
        out_p = build(single_buffer_weights=False)(*args)

    return out_p[:B, :no]


def ref_res_layer(x, w1, b1, w2, b2, wid, bid, mult, add):
    """Exact f32 module semantics."""
    h = jnp.maximum(x @ w1 + b1, 0.0)
    y = jnp.maximum(h @ w2 + b2, 0.0)
    z = (x @ wid + bid) + y
    d = z.shape[-1]
    m = jnp.mean(z, axis=-1, keepdims=True)
    v = jnp.sum((z - m) ** 2, axis=-1, keepdims=True) / (d - 1)   # torch.var default
    zn = (z - m) / jnp.sqrt(v + 1e-5)
    return zn * mult + add


def ref_res_layer_bf16(x, w1, b1, w2, b2, wid, bid, mult, add):
    """Same math with bf16 MXU operands / f32 accumulation (kernel precision)."""
    bf = jnp.bfloat16
    xb = x.astype(bf)
    h = jnp.maximum(jnp.dot(xb, w1.astype(bf),
                            preferred_element_type=jnp.float32) + b1, 0.0)
    y = jnp.maximum(jnp.dot(h.astype(bf), w2.astype(bf),
                            preferred_element_type=jnp.float32) + b2, 0.0)
    r = jnp.dot(xb, wid.astype(bf), preferred_element_type=jnp.float32) + bid
    z = r + y
    d = z.shape[-1]
    m = jnp.mean(z, axis=-1, keepdims=True)
    v = jnp.sum((z - m) ** 2, axis=-1, keepdims=True) / (d - 1)
    return (z - m) / jnp.sqrt(v + 1e-5) * mult + add


if __name__ == "__main__":
    B, ni, no = 8, 32, 64

    key = jax.random.PRNGKey(0)
    k_x, k_w1, k_b1, k_w2, k_b2, k_wid, k_bid = jax.random.split(key, 7)

    x = jax.random.normal(k_x, (B, ni), dtype=jnp.float32)

    # Deterministic synthetic params (~1/sqrt(fan_in) weights, small biases).
    w1 = jax.random.normal(k_w1, (ni, ni), dtype=jnp.float32) / jnp.sqrt(ni)
    b1 = 0.1 * jax.random.normal(k_b1, (ni,), dtype=jnp.float32)
    w2 = jax.random.normal(k_w2, (ni, no), dtype=jnp.float32) / jnp.sqrt(ni)
    b2 = 0.1 * jax.random.normal(k_b2, (no,), dtype=jnp.float32)
    wid = jax.random.normal(k_wid, (ni, no), dtype=jnp.float32) / jnp.sqrt(ni)
    bid = 0.1 * jax.random.normal(k_bid, (no,), dtype=jnp.float32)
    mult, add = 1.3, 0.2

    params = prepare_res_layer_params(w1, b1, w2, b2, wid, bid, mult, add)
    out = jax.block_until_ready(res_layer(x, params))

    assert out.shape == (B, no)

    # Tight check against a reference with the same bf16-MXU / f32-accum precision.
    ref_bf = ref_res_layer_bf16(x, w1, b1, w2, b2, wid, bid, mult, add)
    err_bf = float(jnp.max(jnp.abs(out - ref_bf)))
    assert err_bf < 5e-3, f"mismatch vs bf16-precision reference: {err_bf}"

    # Loose check against the exact f32 module semantics (bf16 operand rounding).
    ref = ref_res_layer(x, w1, b1, w2, b2, wid, bid, mult, add)
    err = float(jnp.max(jnp.abs(out - ref)))
    assert err < 5e-2, f"mismatch vs f32 module reference: {err}"

    print("KERNEL_OK")
</pallas_src>

<mosaic_0001>
module attributes {stable_mosaic.version = 11 : i64} {
  func.func @_res_layer_kernel(%arg0: i32, %arg1: memref<2xf32, #tpu.memory_space<smem>>, %arg2: memref<8x128xbf16, #tpu.memory_space<vmem>>, %arg3: memref<128x256xbf16, #tpu.memory_space<vmem>>, %arg4: memref<1x256xf32, #tpu.memory_space<vmem>>, %arg5: memref<128x128xbf16, #tpu.memory_space<vmem>>, %arg6: memref<1x128xf32, #tpu.memory_space<vmem>>, %arg7: memref<8x128xf32, #tpu.memory_space<vmem>>) attributes {dimension_semantics = [#tpu.dimension_semantics<parallel>], iteration_bounds = array<i64: 1>, scalar_prefetch = 0 : i64, scratch_operands = 0 : i64, tpu.core_type = #tpu.core_type<tc>, window_params = [{transform_indices = @transform_0, window_bounds = array<i64: 2>}, {transform_indices = @transform_1, window_bounds = array<i64: 8, 128>}, {pipeline_mode = #tpu.pipeline_mode<synchronous>, transform_indices = @transform_2, window_bounds = array<i64: 128, 256>}, {pipeline_mode = #tpu.pipeline_mode<synchronous>, transform_indices = @transform_3, window_bounds = array<i64: 1, 256>}, {pipeline_mode = #tpu.pipeline_mode<synchronous>, transform_indices = @transform_4, window_bounds = array<i64: 128, 128>}, {pipeline_mode = #tpu.pipeline_mode<synchronous>, transform_indices = @transform_5, window_bounds = array<i64: 1, 128>}, {transform_indices = @transform_6, window_bounds = array<i64: 8, 128>}]} {
    %c0 = arith.constant 0 : index
    %c0_0 = arith.constant 0 : index
    %0 = vector.load %arg2[%c0, %c0_0] : memref<8x128xbf16, #tpu.memory_space<vmem>>, vector<8x128xbf16>
    %c0_1 = arith.constant 0 : index
    %c0_2 = arith.constant 0 : index
    %1 = vector.load %arg3[%c0_1, %c0_2] : memref<128x256xbf16, #tpu.memory_space<vmem>>, vector<128x256xbf16>
    %cst = arith.constant dense<0.000000e+00> : vector<8x256xf32>
    %2 = tpu.matmul %0, %1, %cst {dimension_numbers = #tpu.dot_dimension_numbers<[1], [0], [0], [1], [0, 0, 1, 1], [], []>} : vector<8x128xbf16>, vector<128x256xbf16>, vector<8x256xf32> -> vector<8x256xf32>
    %c0_3 = arith.constant 0 : index
    %c0_4 = arith.constant 0 : index
    %3 = vector.load %arg4[%c0_3, %c0_4] : memref<1x256xf32, #tpu.memory_space<vmem>>, vector<1x256xf32>
    %4 = vector.broadcast %3 : vector<1x256xf32> to vector<8x256xf32>
    %5 = arith.addf %2, %4 : vector<8x256xf32>
    %6 = vector.extract_strided_slice %5 {offsets = [0, 0], sizes = [8, 128], strides = [1, 1]} : vector<8x256xf32> to vector<8x128xf32>
    %cst_5 = arith.constant 0.000000e+00 : f32
    %7 = vector.broadcast %cst_5 : f32 to vector<8x128xf32>
    %8 = arith.maximumf %6, %7 : vector<8x128xf32>
    %9 = vector.extract_strided_slice %5 {offsets = [0, 128], sizes = [8, 128], strides = [1, 1]} : vector<8x256xf32> to vector<8x128xf32>
    %10 = arith.truncf %8 : vector<8x128xf32> to vector<8x128xbf16>
    %c0_6 = arith.constant 0 : index
    %c0_7 = arith.constant 0 : index
    %11 = vector.load %arg5[%c0_6, %c0_7] : memref<128x128xbf16, #tpu.memory_space<vmem>>, vector<128x128xbf16>
    %cst_8 = arith.constant dense<0.000000e+00> : vector<8x128xf32>
    %12 = tpu.matmul %10, %11, %cst_8 {dimension_numbers = #tpu.dot_dimension_numbers<[1], [0], [0], [1], [0, 0, 1, 1], [], []>} : vector<8x128xbf16>, vector<128x128xbf16>, vector<8x128xf32> -> vector<8x128xf32>
    %c0_9 = arith.constant 0 : index
    %c0_10 = arith.constant 0 : index
    %13 = vector.load %arg6[%c0_9, %c0_10] : memref<1x128xf32, #tpu.memory_space<vmem>>, vector<1x128xf32>
    %14 = vector.broadcast %13 : vector<1x128xf32> to vector<8x128xf32>
    %15 = arith.addf %12, %14 : vector<8x128xf32>
    %cst_11 = arith.constant 0.000000e+00 : f32
    %16 = vector.broadcast %cst_11 : f32 to vector<8x128xf32>
    %17 = arith.maximumf %15, %16 : vector<8x128xf32>
    %18 = arith.addf %9, %17 : vector<8x128xf32>
    %cst_12 = arith.constant dense<0.000000e+00> : vector<8xf32>
    %19 = vector.multi_reduction <add>, %18, %cst_12 [1] : vector<8x128xf32> to vector<8xf32>
    %20 = vector.shape_cast %19 : vector<8xf32> to vector<8x1xf32>
    %cst_13 = arith.constant 1.562500e-02 : f32
    %21 = vector.broadcast %cst_13 : f32 to vector<8x1xf32>
    %22 = arith.mulf %20, %21 : vector<8x1xf32>
    %23 = tpu.iota {dimensions = array<i32: 1>} : vector<8x128xi32>
    %c64_i32 = arith.constant 64 : i32
    %24 = vector.broadcast %c64_i32 : i32 to vector<8x128xi32>
    %25 = arith.cmpi slt, %23, %24 : vector<8x128xi32>
    %26 = vector.broadcast %22 : vector<8x1xf32> to vector<8x128xf32>
    %27 = arith.subf %18, %26 : vector<8x128xf32>
    %cst_14 = arith.constant 0.000000e+00 : f32
    %28 = vector.broadcast %cst_14 : f32 to vector<8x128xf32>
    %29 = arith.select %25, %27, %28 : vector<8x128xi1>, vector<8x128xf32>
    %30 = arith.mulf %29, %29 : vector<8x128xf32>
    %cst_15 = arith.constant dense<0.000000e+00> : vector<8xf32>
    %31 = vector.multi_reduction <add>, %30, %cst_15 [1] : vector<8x128xf32> to vector<8xf32>
    %32 = vector.shape_cast %31 : vector<8xf32> to vector<8x1xf32>
    %cst_16 = arith.constant 0.0158730168 : f32
    %33 = vector.broadcast %cst_16 : f32 to vector<8x1xf32>
    %34 = arith.mulf %32, %33 : vector<8x1xf32>
    %cst_17 = arith.constant 9.99999974E-6 : f32
    %35 = vector.broadcast %cst_17 : f32 to vector<8x1xf32>
    %36 = arith.addf %34, %35 : vector<8x1xf32>
    %37 = math.rsqrt %36 : vector<8x1xf32>
    %c0_18 = arith.constant 0 : index
    %38 = memref.load %arg1[%c0_18] : memref<2xf32, #tpu.memory_space<smem>>
    %c1 = arith.constant 1 : index
    %39 = memref.load %arg1[%c1] : memref<2xf32, #tpu.memory_space<smem>>
    %40 = vector.broadcast %37 : vector<8x1xf32> to vector<8x128xf32>
    %41 = arith.mulf %29, %40 : vector<8x128xf32>
    %42 = vector.broadcast %38 : f32 to vector<8x128xf32>
    %43 = arith.mulf %41, %42 : vector<8x128xf32>
    %44 = vector.broadcast %39 : f32 to vector<8x128xf32>
    %45 = arith.addf %43, %44 : vector<8x128xf32>
    %c0_19 = arith.constant 0 : index
    %c0_20 = arith.constant 0 : index
    %46 = vector.load %arg7[%c0_19, %c0_20] : memref<8x128xf32, #tpu.memory_space<vmem>>, vector<8x128xf32>
    tpu.vector_store %arg7[%c0_19, %c0_20], %45 {strides = array<i32>} : memref<8x128xf32, #tpu.memory_space<vmem>>, vector<8x128xf32>,
    return
  }
  func.func @transform_0(%arg0: i32) -> i32 {
    %c0_i32 = arith.constant 0 : i32
    %c0_i32_0 = arith.constant 0 : i32
    return %c0_i32 : i32
  }
  func.func @transform_1(%arg0: i32) -> (i32, i32) {
    %c0_i32 = arith.constant 0 : i32
    %c0_i32_0 = arith.constant 0 : i32
    return %arg0, %c0_i32 : i32, i32
  }
  func.func @transform_2(%arg0: i32) -> (i32, i32) {
    %c0_i32 = arith.constant 0 : i32
    %c0_i32_0 = arith.constant 0 : i32
    %c0_i32_1 = arith.constant 0 : i32
    return %c0_i32, %c0_i32_0 : i32, i32
  }
  func.func @transform_3(%arg0: i32) -> (i32, i32) {
    %c0_i32 = arith.constant 0 : i32
    %c0_i32_0 = arith.constant 0 : i32
    %c0_i32_1 = arith.constant 0 : i32
    return %c0_i32, %c0_i32_0 : i32, i32
  }
  func.func @transform_4(%arg0: i32) -> (i32, i32) {
    %c0_i32 = arith.constant 0 : i32
    %c0_i32_0 = arith.constant 0 : i32
    %c0_i32_1 = arith.constant 0 : i32
    return %c0_i32, %c0_i32_0 : i32, i32
  }
  func.func @transform_5(%arg0: i32) -> (i32, i32) {
    %c0_i32 = arith.constant 0 : i32
    %c0_i32_0 = arith.constant 0 : i32
    %c0_i32_1 = arith.constant 0 : i32
    return %c0_i32, %c0_i32_0 : i32, i32
  }
  func.func @transform_6(%arg0: i32) -> (i32, i32) {
    %c0_i32 = arith.constant 0 : i32
    %c0_i32_0 = arith.constant 0 : i32
    return %arg0, %c0_i32 : i32, i32
  }
}

module attributes {stable_mosaic.version = 11 : i64} {
  func.func @_res_layer_kernel(%arg0: i32, %arg1: memref<2xf32, #tpu.memory_space<smem>>, %arg2: memref<8x128xbf16, #tpu.memory_space<vmem>>, %arg3: memref<128x256xbf16, #tpu.memory_space<vmem>>, %arg4: memref<1x256xf32, #tpu.memory_space<vmem>>, %arg5: memref<128x128xbf16, #tpu.memory_space<vmem>>, %arg6: memref<1x128xf32, #tpu.memory_space<vmem>>, %arg7: memref<8x128xf32, #tpu.memory_space<vmem>>) attributes {dimension_semantics = [#tpu.dimension_semantics<parallel>], iteration_bounds = array<i64: 1>, scalar_prefetch = 0 : i64, scratch_operands = 0 : i64, tpu.core_type = #tpu.core_type<tc>, window_params = [{transform_indices = @transform_0, window_bounds = array<i64: 2>}, {transform_indices = @transform_1, window_bounds = array<i64: 8, 128>}, {pipeline_mode = #tpu.pipeline_mode<synchronous>, transform_indices = @transform_2, window_bounds = array<i64: 128, 256>}, {pipeline_mode = #tpu.pipeline_mode<synchronous>, transform_indices = @transform_3, window_bounds = array<i64: 1, 256>}, {pipeline_mode = #tpu.pipeline_mode<synchronous>, transform_indices = @transform_4, window_bounds = array<i64: 128, 128>}, {pipeline_mode = #tpu.pipeline_mode<synchronous>, transform_indices = @transform_5, window_bounds = array<i64: 1, 128>}, {transform_indices = @transform_6, window_bounds = array<i64: 8, 128>}]} {
    %c0 = arith.constant 0 : index
    %c0_0 = arith.constant 0 : index
    %0 = vector.load %arg2[%c0, %c0_0] : memref<8x128xbf16, #tpu.memory_space<vmem>>, vector<8x128xbf16>
    %c0_1 = arith.constant 0 : index
    %c0_2 = arith.constant 0 : index
    %1 = vector.load %arg3[%c0_1, %c0_2] : memref<128x256xbf16, #tpu.memory_space<vmem>>, vector<128x256xbf16>
    %cst = arith.constant dense<0.000000e+00> : vector<8x256xf32>
    %2 = tpu.matmul %0, %1, %cst {dimension_numbers = #tpu.dot_dimension_numbers<[1], [0], [0], [1], [0, 0, 1, 1], [], []>} : vector<8x128xbf16>, vector<128x256xbf16>, vector<8x256xf32> -> vector<8x256xf32>
    %c0_3 = arith.constant 0 : index
    %c0_4 = arith.constant 0 : index
    %3 = vector.load %arg4[%c0_3, %c0_4] : memref<1x256xf32, #tpu.memory_space<vmem>>, vector<1x256xf32>
    %4 = vector.broadcast %3 : vector<1x256xf32> to vector<8x256xf32>
    %5 = arith.addf %2, %4 : vector<8x256xf32>
    %6 = vector.extract_strided_slice %5 {offsets = [0, 0], sizes = [8, 128], strides = [1, 1]} : vector<8x256xf32> to vector<8x128xf32>
    %cst_5 = arith.constant 0.000000e+00 : f32
    %7 = vector.broadcast %cst_5 : f32 to vector<8x128xf32>
    %8 = arith.maximumf %6, %7 : vector<8x128xf32>
    %9 = vector.extract_strided_slice %5 {offsets = [0, 128], sizes = [8, 128], strides = [1, 1]} : vector<8x256xf32> to vector<8x128xf32>
    %10 = arith.truncf %8 : vector<8x128xf32> to vector<8x128xbf16>
    %c0_6 = arith.constant 0 : index
    %c0_7 = arith.constant 0 : index
    %11 = vector.load %arg5[%c0_6, %c0_7] : memref<128x128xbf16, #tpu.memory_space<vmem>>, vector<128x128xbf16>
    %cst_8 = arith.constant dense<0.000000e+00> : vector<8x128xf32>
    %12 = tpu.matmul %10, %11, %cst_8 {dimension_numbers = #tpu.dot_dimension_numbers<[1], [0], [0], [1], [0, 0, 1, 1], [], []>} : vector<8x128xbf16>, vector<128x128xbf16>, vector<8x128xf32> -> vector<8x128xf32>
    %c0_9 = arith.constant 0 : index
    %c0_10 = arith.constant 0 : index
    %13 = vector.load %arg6[%c0_9, %c0_10] : memref<1x128xf32, #tpu.memory_space<vmem>>, vector<1x128xf32>
    %14 = vector.broadcast %13 : vector<1x128xf32> to vector<8x128xf32>
    %15 = arith.addf %12, %14 : vector<8x128xf32>
    %cst_11 = arith.constant 0.000000e+00 : f32
    %16 = vector.broadcast %cst_11 : f32 to vector<8x128xf32>
    %17 = arith.maximumf %15, %16 : vector<8x128xf32>
    %18 = arith.addf %9, %17 : vector<8x128xf32>
    %cst_12 = arith.constant dense<0.000000e+00> : vector<8xf32>
    %19 = vector.multi_reduction <add>, %18, %cst_12 [1] : vector<8x128xf32> to vector<8xf32>
    %20 = vector.shape_cast %19 : vector<8xf32> to vector<8x1xf32>
    %cst_13 = arith.constant 1.562500e-02 : f32
    %21 = vector.broadcast %cst_13 : f32 to vector<8x1xf32>
    %22 = arith.mulf %20, %21 : vector<8x1xf32>
    %23 = tpu.iota {dimensions = array<i32: 1>} : vector<8x128xi32>
    %c64_i32 = arith.constant 64 : i32
    %24 = vector.broadcast %c64_i32 : i32 to vector<8x128xi32>
    %25 = arith.cmpi slt, %23, %24 : vector<8x128xi32>
    %26 = vector.broadcast %22 : vector<8x1xf32> to vector<8x128xf32>
    %27 = arith.subf %18, %26 : vector<8x128xf32>
    %cst_14 = arith.constant 0.000000e+00 : f32
    %28 = vector.broadcast %cst_14 : f32 to vector<8x128xf32>
    %29 = arith.select %25, %27, %28 : vector<8x128xi1>, vector<8x128xf32>
    %30 = arith.mulf %29, %29 : vector<8x128xf32>
    %cst_15 = arith.constant dense<0.000000e+00> : vector<8xf32>
    %31 = vector.multi_reduction <add>, %30, %cst_15 [1] : vector<8x128xf32> to vector<8xf32>
    %32 = vector.shape_cast %31 : vector<8xf32> to vector<8x1xf32>
    %cst_16 = arith.constant 0.0158730168 : f32
    %33 = vector.broadcast %cst_16 : f32 to vector<8x1xf32>
    %34 = arith.mulf %32, %33 : vector<8x1xf32>
    %cst_17 = arith.constant 9.99999974E-6 : f32
    %35 = vector.broadcast %cst_17 : f32 to vector<8x1xf32>
    %36 = arith.addf %34, %35 : vector<8x1xf32>
    %37 = math.rsqrt %36 : vector<8x1xf32>
    %c0_18 = arith.constant 0 : index
    %38 = memref.load %arg1[%c0_18] : memref<2xf32, #tpu.memory_space<smem>>
    %c1 = arith.constant 1 : index
    %39 = memref.load %arg1[%c1] : memref<2xf32, #tpu.memory_space<smem>>
    %40 = vector.broadcast %37 : vector<8x1xf32> to vector<8x128xf32>
    %41 = arith.mulf %29, %40 : vector<8x128xf32>
    %42 = vector.broadcast %38 : f32 to vector<8x128xf32>
    %43 = arith.mulf %41, %42 : vector<8x128xf32>
    %44 = vector.broadcast %39 : f32 to vector<8x128xf32>
    %45 = arith.addf %43, %44 : vector<8x128xf32>
    %c0_19 = arith.constant 0 : index
    %c0_20 = arith.constant 0 : index
    %46 = vector.load %arg7[%c0_19, %c0_20] : memref<8x128xf32, #tpu.memory_space<vmem>>, vector<8x128xf32>
    tpu.vector_store %arg7[%c0_19, %c0_20], %45 {strides = array<i32>} : memref<8x128xf32, #tpu.memory_space<vmem>>, vector<8x128xf32>,
    return
  }
  func.func @transform_0(%arg0: i32) -> i32 {
    %c0_i32 = arith.constant 0 : i32
    %c0_i32_0 = arith.constant 0 : i32
    return %c0_i32 : i32
  }
  func.func @transform_1(%arg0: i32) -> (i32, i32) {
    %c0_i32 = arith.constant 0 : i32
    %c0_i32_0 = arith.constant 0 : i32
    return %arg0, %c0_i32 : i32, i32
  }
  func.func @transform_2(%arg0: i32) -> (i32, i32) {
    %c0_i32 = arith.constant 0 : i32
    %c0_i32_0 = arith.constant 0 : i32
    %c0_i32_1 = arith.constant 0 : i32
    return %c0_i32, %c0_i32_0 : i32, i32
  }
  func.func @transform_3(%arg0: i32) -> (i32, i32) {
    %c0_i32 = arith.constant 0 : i32
    %c0_i32_0 = arith.constant 0 : i32
    %c0_i32_1 = arith.constant 0 : i32
    return %c0_i32, %c0_i32_0 : i32, i32
  }
  func.func @transform_4(%arg0: i32) -> (i32, i32) {
    %c0_i32 = arith.constant 0 : i32
    %c0_i32_0 = arith.constant 0 : i32
    %c0_i32_1 = arith.constant 0 : i32
    return %c0_i32, %c0_i32_0 : i32, i32
  }
  func.func @transform_5(%arg0: i32) -> (i32, i32) {
    %c0_i32 = arith.constant 0 : i32
    %c0_i32_0 = arith.constant 0 : i32
    %c0_i32_1 = arith.constant 0 : i32
    return %c0_i32, %c0_i32_0 : i32, i32
  }
  func.func @transform_6(%arg0: i32) -> (i32, i32) {
    %c0_i32 = arith.constant 0 : i32
    %c0_i32_0 = arith.constant 0 : i32
    return %arg0, %c0_i32 : i32, i32
  }
}

</mosaic_0001>

<bundles_post_ra>
// kernel: tpu_custom_call.1
= control target key start
LH: loop header
LB: loop body
LE: loop exit
PB: predicated region body
PF: predicated region fallthrough
CT: control target
= control target key end

     0   :  { %11 = vsyncpa [#allocation5], 0  ;;  %s706_s0 = inlined_call_operand.hbm [shape: f32[2], index: 0, kind: input, shape index: {}]   ;;  %s707_s1 = inlined_call_operand.hbm [shape: bf16[8,128], index: 1, kind: input, shape index: {}]   ;;  %s708_s2 = inlined_call_operand.hbm [shape: bf16[128,256], index: 2, kind: input, shape index: {}]   ;;  %s709_s3 = inlined_call_operand.vmem [shape: f32[1,256], index: 3, kind: input, shape index: {}]   ;;  %s710_s4 = inlined_call_operand.hbm [shape: bf16[128,128], index: 4, kind: input, shape index: {}]   ;;  %s711_s5 = inlined_call_operand.vmem [shape: f32[1,128], index: 5, kind: input, shape index: {}]   ;;  %s712_s6 = inlined_call_operand.hbm [shape: f32[8,128], index: 6, kind: output, shape index: {}]  }
   0x1   :  { %12 = vsyncpa [#allocation3], 0 }
   0x2   :  { %13 = vsyncpa [#allocation8], 0 }
   0x3   :  { %14 = vsyncpa [#allocation4], 0  ;;  %s586_s21 = smov [#allocation7]   ;;  %s480_s25 = scalar_lea.hbm %s708_s2, 2048 }
   0x4   :  { %s38_s22 = sshll.u32 %s586_s21, 4  ;;  %p481_p0 = scmp.ne.s32.totalorder %s708_s2, %s480_s25  ;;  %s39_s22 = int_to_ptr.vmem [resolvable:$true] %s38_s22 }
   0x5   :  { %p484_p1 = scmp.lt.u32.totalorder %s480_s25, %s708_s2 }
   0x7   :  { %p486_p2 = pnand %p484_p1, %p481_p0 }
   0x9   :  { %489 = shalt.err (!%p486_p2)
}
   0xa   :  { %s490_s30 = scalar_lea.vmem %s39_s22, 2048  ;;  %p495_p4 = scmp.lt.s32.totalorder %s39_s22, %s39_s22 }
   0xb   :  { %p491_p3 = scmp.ne.s32.totalorder %s39_s22, %s490_s30  ;;  %p496_p5 = scmp.lt.s32.totalorder %s490_s30, %s490_s30 }
   0xd   :  { %p497_p6 = por %p496_p5, %p495_p4 }
   0xf   :  { %p498_p7 = pnand %p497_p6, %p491_p3 }
  0x11   :  { %501 = shalt.err (!%p498_p7)
}
  0x12   :  { %s587_s7 = smov 128   ;;  %s588_s8 = smov 8  }
  0x13   :  { %44 = dma.hbm_to_vmem [thread:$0]  %s708_s2, 2048, %s39_s22, [#allocation8], %s587_s7, %s587_s7, %s588_s8  }
  0x14   :  { %s502_s13 = scalar_lea.hbm %s706_s0, 16 }
  0x15   :  { %p503_p8 = scmp.ne.s32.totalorder %s706_s0, %s502_s13  ;;  %p506_p9 = scmp.lt.u32.totalorder %s502_s13, %s706_s0 }
  0x17   :  { %p508_p10 = pnand %p506_p9, %p503_p8 }
  0x19   :  { %511 = shalt.err (!%p508_p10)
}
  0x1a   :  { %s589_s18 = smov [#allocation2]   ;;  %s590_s2 = smov [#allocation6]  }
  0x1b   :  { %22 = dma.hbm_to_smem %s706_s0, 16, %s589_s18, [#allocation5]  }
  0x1c   :  { %s29_s21 = sshll.u32 %s590_s2, 4  ;;  %s591_s22 = smov [#allocation9]   ;;  %s30_s21 = int_to_ptr.vmem [resolvable:$true] %s29_s21 }
  0x1d   :  { %s52_s23 = sshll.u32 %s591_s22, 4  ;;  %s512_s26 = scalar_lea.hbm %s707_s1, 64  ;;  %s657_s23 = int_to_ptr.vmem [resolvable:$true] %s52_s23 }
  0x1e   :  { %p513_p11 = scmp.ne.s32.totalorder %s707_s1, %s512_s26  ;;  %p516_p12 = scmp.lt.u32.totalorder %s512_s26, %s707_s1 }
  0x20   :  { %p518_p13 = pnand %p516_p12, %p513_p11 }
  0x22   :  { %521 = shalt.err (!%p518_p13)
}
  0x23   :  { %s522_s0 = scalar_lea.vmem %s30_s21, 64  ;;  %p527_p1 = scmp.lt.s32.totalorder %s30_s21, %s30_s21 }
  0x24   :  { %p523_p0 = scmp.ne.s32.totalorder %s30_s21, %s522_s0  ;;  %p528_p2 = scmp.lt.s32.totalorder %s522_s0, %s522_s0 }
  0x26   :  { %p529_p3 = por %p528_p2, %p527_p1 }
  0x28   :  { %p530_p4 = pnand %p529_p3, %p523_p0 }
  0x2a   :  { %533 = shalt.err (!%p530_p4)
}
  0x2b   :  { %32 = dma.hbm_to_vmem [thread:$0]  %s707_s1, 64, %s30_s21, [#allocation3]  }
  0x2c   :  { %s534_s11 = scalar_lea.hbm %s710_s4, 1024 }
  0x2d   :  { %p535_p5 = scmp.ne.s32.totalorder %s710_s4, %s534_s11  ;;  %p538_p6 = scmp.lt.u32.totalorder %s534_s11, %s710_s4 }
  0x2f   :  { %p540_p7 = pnand %p538_p6, %p535_p5 }
  0x31   :  { %543 = shalt.err (!%p540_p7)
}
  0x32   :  { %s544_s16 = scalar_lea.vmem %s657_s23, 1024  ;;  %p549_p9 = scmp.lt.s32.totalorder %s657_s23, %s657_s23 }
  0x33   :  { %p545_p8 = scmp.ne.s32.totalorder %s657_s23, %s544_s16  ;;  %p550_p10 = scmp.lt.s32.totalorder %s544_s16, %s544_s16 }
  0x35   :  { %p551_p11 = por %p550_p10, %p549_p9 }
  0x37   :  { %p552_p12 = pnand %p551_p11, %p545_p8 }
  0x39   :  { %555 = shalt.err (!%p552_p12)
}
  0x3a   :  { %s592_s1 = smov 64   ;;  %s593_s17 = smov 4  }
  0x3b   :  { %58 = dma.hbm_to_vmem [thread:$0]  %s710_s4, 1024, %s657_s23, [#allocation8], %s592_s1, %s592_s1, %s593_s17  }
  0x3c   :  { %578 = dma.done.wait [#allocation5], 16  }
  0x3d   :  { %579 = vsyncadd [#allocation5], 4294967280 }
  0x3e   :  { %580 = dma.done.wait [#allocation3], 64  }
  0x3f   :  { %581 = vsyncadd [#allocation3], 4294967232 }
  0x40   :  { %582 = dma.done.wait [#allocation8], 3072  }
  0x41   :  { %583 = vsyncadd [#allocation8], 4294964224 }
  0x42   :  { %73 = sfence }
  0x43   :  { %v446_v0 = vld [vmem:[#allocation7 + $0x4] ss:$8 sps:$4 sm:$0xff]   ;;  %v448_v1 = vld [vmem:[#allocation7] ss:$8 sps:$4 sm:$0xff]   ;;  %v594_v2 = vmov 0   ;;  %v595_v3 = vmov 0.0   ;;  %v94_v27 = vlaneseq }
  0x44   :  { %216 = vmatprep.mubr.bf16.mxu0 %v594_v2  ;;  %414 = vmatprep.subr.bf16.mxu1 %v595_v3  ;;  %v449_v4 = vld [vmem:[#allocation7 + $0x14] ss:$8 sps:$4 sm:$0xff]   ;;  %v451_v5 = vld [vmem:[#allocation7 + $0x10] ss:$8 sps:$4 sm:$0xff]   ;;  %v452_v6 = vld [vmem:[#allocation7 + $0x24] ss:$8 sps:$4 sm:$0xff]  }
  0x45   :  { %184 = vmatprep.subr.bf16.mxu0 %v446_v0  ;;  %v454_v7 = vld [vmem:[#allocation7 + $0x20] ss:$8 sps:$4 sm:$0xff]   ;;  %v455_v8 = vld [vmem:[#allocation7 + $0x34] ss:$8 sps:$4 sm:$0xff]   ;;  %v457_v9 = vld [vmem:[#allocation7 + $0x30] ss:$8 sps:$4 sm:$0xff]  }
  0x46   :  { %185 = vmatpush1.bf16.msra.mxu0 %v448_v1  ;;  %v470_v10 = vld [vmem:[#allocation9] sm:$0xff]   ;;  %v471_v12 = vld [vmem:[#allocation9 + $0x8] sm:$0xff]   ;;  %v461_v14 = vld [vmem:[#allocation7 + $0x54] ss:$8 sps:$4 sm:$0xff]   ;;  %vm596_vm0 = vmmov 0   ;;  %v95_v28 = vshrl.u32 %v94_v27, 7 }
  0x47   :  { %186 = vmatprep.subr.bf16.mxu0 %v449_v4  ;;  %v458_v11 = vld [vmem:[#allocation7 + $0x44] ss:$8 sps:$4 sm:$0xff]   ;;  %415 = vmatpush3.bf16.msra.mxu1 %v470_v10  ;;  %v460_v13 = vld [vmem:[#allocation7 + $0x40] ss:$8 sps:$4 sm:$0xff]   ;;  %v472_v15 = vld [vmem:[#allocation9 + $0x10] sm:$0xff]   ;;  %v344_v50 = vand.u32 127, %v94_v27 }
  0x48   :  { %416 = vmatprep.subr.bf16.mxu1 %v595_v3  ;;  %v463_v16 = vld [vmem:[#allocation7 + $0x50] ss:$8 sps:$4 sm:$0xff]   ;;  %v464_v17 = vld [vmem:[#allocation7 + $0x64] ss:$8 sps:$4 sm:$0xff]   ;;  %v466_v19 = vld [vmem:[#allocation7 + $0x60] ss:$8 sps:$4 sm:$0xff]   ;;  %430 = vmatprep.mubr.msk.bf16.mxu1 %vm596_vm0, %v595_v3 }
  0x49   :  { %v473_v18 = vld [vmem:[#allocation9 + $0x18] sm:$0xff]   ;;  %v474_v21 = vld [vmem:[#allocation9 + $0x20] sm:$0xff]   ;;  %v475_v23 = vld [vmem:[#allocation9 + $0x28] sm:$0xff]   ;;  %v96_v29 = vsub.s32 0, %v95_v28  ;;  %v100_v39 = vsub.s32 1, %v95_v28  ;;  %vm345_vm1 = vcmp.lt.s32.totalorder %v344_v50, 64 }
  0x4a   :  { %187 = vmatpush1.bf16.msra.mxu0 %v451_v5  ;;  %v467_v20 = vld [vmem:[#allocation7 + $0x74] ss:$8 sps:$4 sm:$0xff]   ;;  %v469_v22 = vld [vmem:[#allocation7 + $0x70] ss:$8 sps:$4 sm:$0xff]   ;;  %s597_s22 = smov [#allocation10]  }
  0x4b   :  { %188 = vmatprep.subr.bf16.mxu0 %v452_v6  ;;  %417 = vmatpush3.bf16.msra.mxu1 %v471_v12  ;;  %v75_v24 = vld [vmem:[#allocation6] sm:$0xf]  ;;  %v476_v25 = vld [vmem:[#allocation9 + $0x30] sm:$0xff]   ;;  %s368_s23 = sshll.u32 %s597_s22, 4  ;;  %s369_s23 = int_to_ptr.vmem [resolvable:$true] %s368_s23 }
  0x4c   :  { %418 = vmatprep.subr.bf16.mxu1 %v595_v3  ;;  %v477_v26 = vld [vmem:[#allocation9 + $0x38] sm:$0xff]   ;;  %v92_v30 = vld [vmem:[%s709_s3] sm:$0x3]  ;;  %s354_s3 = sld [smem:[#allocation2]]  ;;  %s556_s24 = scalar_lea.vmem %s369_s23, 128 }
  0x4d   :  { %v97_v31 = vrot.slane %v92_v30, %v96_v29  ;;  %v395_v40 = vld [vmem:[%s711_s5] ss:$0 sm:$0xff]  ;;  %v101_v41 = vrot.slane %v92_v30, %v100_v39  ;;  %s404_s5 = sld [smem:[#allocation2 + $0x1]]  ;;  %p557_p13 = scmp.ne.s32.totalorder %s369_s23, %s556_s24 }
  0x4e   :  { %189 = vmatpush1.bf16.msra.mxu0 %v454_v7  ;;  %p561_p0 = scmp.lt.s32.totalorder %s369_s23, %s369_s23  ;;  %p562_p1 = scmp.lt.s32.totalorder %s556_s24, %s556_s24 }
  0x4f   :  { %190 = vmatprep.subr.bf16.mxu0 %v455_v8  ;;  %419 = vmatpush3.bf16.msra.mxu1 %v472_v15 }
  0x50   :  { %420 = vmatprep.subr.bf16.mxu1 %v595_v3  ;;  %p563_p2 = por %p562_p1, %p561_p0 }
  0x52   :  { %191 = vmatpush1.bf16.msra.mxu0 %v457_v9  ;;  %v357_v60 = vstv %s354_s3  ;;  %p564_p3 = pnand %p563_p2, %p557_p13 }
  0x53   :  { %192 = vmatprep.subr.bf16.mxu0 %v458_v11  ;;  %421 = vmatpush3.bf16.msra.mxu1 %v473_v18  ;;  %v359_v62 = vstv %s404_s5 }
  0x54   :  { %422 = vmatprep.subr.bf16.mxu1 %v595_v3 }
  0x56   :  { %193 = vmatpush1.bf16.msra.mxu0 %v460_v13 }
  0x57   :  { %194 = vmatprep.subr.bf16.mxu0 %v461_v14  ;;  %423 = vmatpush3.bf16.msra.mxu1 %v474_v21 }
  0x58   :  { %424 = vmatprep.subr.bf16.mxu1 %v595_v3 }
  0x5a   :  { %195 = vmatpush1.bf16.msra.mxu0 %v463_v16 }
  0x5b   :  { %196 = vmatprep.subr.bf16.mxu0 %v464_v17  ;;  %425 = vmatpush3.bf16.msra.mxu1 %v475_v23 }
  0x5c   :  { %426 = vmatprep.subr.bf16.mxu1 %v595_v3 }
  0x5e   :  { %197 = vmatpush1.bf16.msra.mxu0 %v466_v19 }
  0x5f   :  { %198 = vmatprep.subr.bf16.mxu0 %v467_v20  ;;  %427 = vmatpush3.bf16.msra.mxu1 %v476_v25 }
  0x60   :  { %428 = vmatprep.subr.bf16.mxu1 %v595_v3 }
  0x62   :  { %199 = vmatpush1.bf16.msra.mxu0 %v469_v22 }
  0x63   :  { %429 = vmatpush3.bf16.msra.mxu1 %v477_v26 }
  0x65   :  { %217 = vmatmul.mubr.bf16.vlgmr.msra.gmra.mrb[0].mxu0 %v75_v24 }
 0x138   :  { %v218_v32 = vpop.f32.mrb[0].mxu0 }
 0x139   :  { %v219_v33 = vadd.f32 %v218_v32, %v97_v31  ;;  %v220_v34 = vpop.f32.mrb[1].mxu0 }
 0x13a   :  { %v222_v35 = vpop.f32.mrb[2].mxu0  ;;  %v221_v46 = vadd.f32 %v220_v34, %v101_v41 }
 0x13b   :  { %v225_v36 = vmax.f32 %v219_v33, 0.0  ;;  %v223_v37 = vpop.f32.mrb[3].mxu0 }
 0x13d   :  { %v226_v38 = vpack.c.bf16 %v225_v36, %v225_v36 }
 0x13f   :  { %431 = vmatmul.mubr.bf16.vlgmr.msra.gmra.mrb[0].mxu1 %v226_v38 }
 0x212   :  { %v332_v42 = vpop.f32.mrb[0].mxu1 }
 0x213   :  { %v333_v43 = vadd.f32 %v395_v40, %v332_v42  ;;  %v432_v44 = vpop.f32.mrb[1].mxu1 }
 0x214   :  { %v335_v45 = vpop.f32.mrb[2].mxu1 }
 0x215   :  { %v338_v47 = vmax.f32 %v333_v43, 0.0  ;;  %v433_v48 = vpop.f32.mrb[3].mxu1 }
 0x217   :  { %v339_v49 = vadd.f32 %v338_v47, %v221_v46 }
 0x219   :  { %340 = vadd.xlane.f32.xlu0 %v339_v49 }
 0x2a6   :  { %v341_v51 = vpop.xlane.xlu0 %340 }
 0x2a7   :  { %v342_v52 = vmul.f32 0.015625, %v341_v51 }
 0x2a9   :  { %v346_v53 = vsub.f32 %v339_v49, %v342_v52 }
 0x2ab   :  { %v347_v54 = vsel %vm345_vm1, %v346_v53, 0.0 }
 0x2ac   :  { %v348_v55 = vmul.f32 %v347_v54, %v347_v54 }
 0x2ae   :  { %349 = vadd.xlane.f32.xlu0 %v348_v55 }
 0x33b   :  { %v350_v56 = vpop.xlane.xlu0 %349 }
 0x33c   :  { %v351_v57 = vmul.f32 0.015873017, %v350_v56 }
 0x33e   :  { %v352_v58 = vadd.f32 1e-05, %v351_v57 }
 0x340   :  { %478 = vrsqrt.f32 %v352_v58 }
 0x34a   :  { %v479_v59 = vpop.eup %478 }
 0x34b   :  { %v356_v61 = vmul.f32 %v479_v59, %v347_v54 }
 0x34d   :  { %v358_v63 = vmul.f32 %v357_v60, %v356_v61 }
 0x34f   :  { %v360_v0 = vadd.f32 %v359_v62, %v358_v63 }
 0x351   :  { %361 = vst [vmem:[#allocation10] sm:$0xff] %v360_v0 }
 0x352   :  { %567 = shalt.err (!%p564_p3)
}
 0x353   :  { %s568_s27 = scalar_lea.hbm %s712_s6, 128 }
 0x354   :  { %p569_p4 = scmp.ne.s32.totalorder %s712_s6, %s568_s27  ;;  %p572_p5 = scmp.lt.u32.totalorder %s568_s27, %s712_s6 }
 0x356   :  { %p574_p6 = pnand %p572_p5, %p569_p4 }
 0x358   :  { %577 = shalt.err (!%p574_p6)
}
 0x359   :  { %371 = dma.vmem_to_hbm [thread:$0]  %s369_s23, 128, %s712_s6, [#allocation4]  }
 0x35a   :  { %584 = dma.done.wait [#allocation4], 128  }
 0x35b   :  { %585 = vsyncadd [#allocation4], 4294967168 }
 0x35c   :  { %375 = vsyncpa [#allocation3], 1 }
 0x35d   :  { %376 = vsyncpa [#allocation8], 1 }
 0x35e   :  { %377 = vsyncpa [#allocation4], 1 }
 0x35f   :  { %378 = vsyncpa [#allocation5], 1 }

// kernel: tpu_custom_call.1
= control target key start
LH: loop header
LB: loop body
LE: loop exit
PB: predicated region body
PF: predicated region fallthrough
CT: control target
= control target key end

     0   :  { %11 = vsyncpa [#allocation5], 0  ;;  %s706_s0 = inlined_call_operand.hbm [shape: f32[2], index: 0, kind: input, shape index: {}]   ;;  %s707_s1 = inlined_call_operand.hbm [shape: bf16[8,128], index: 1, kind: input, shape index: {}]   ;;  %s708_s2 = inlined_call_operand.hbm [shape: bf16[128,256], index: 2, kind: input, shape index: {}]   ;;  %s709_s3 = inlined_call_operand.vmem [shape: f32[1,256], index: 3, kind: input, shape index: {}]   ;;  %s710_s4 = inlined_call_operand.hbm [shape: bf16[128,128], index: 4, kind: input, shape index: {}]   ;;  %s711_s5 = inlined_call_operand.vmem [shape: f32[1,128], index: 5, kind: input, shape index: {}]   ;;  %s712_s6 = inlined_call_operand.hbm [shape: f32[8,128], index: 6, kind: output, shape index: {}]  }
   0x1   :  { %12 = vsyncpa [#allocation3], 0 }
   0x2   :  { %13 = vsyncpa [#allocation8], 0 }
   0x3   :  { %14 = vsyncpa [#allocation4], 0  ;;  %s586_s21 = smov [#allocation7]   ;;  %s480_s25 = scalar_lea.hbm %s708_s2, 2048 }
   0x4   :  { %s38_s22 = sshll.u32 %s586_s21, 4  ;;  %p481_p0 = scmp.ne.s32.totalorder %s708_s2, %s480_s25  ;;  %s39_s22 = int_to_ptr.vmem [resolvable:$true] %s38_s22 }
   0x5   :  { %p484_p1 = scmp.lt.u32.totalorder %s480_s25, %s708_s2 }
   0x7   :  { %p486_p2 = pnand %p484_p1, %p481_p0 }
   0x9   :  { %489 = shalt.err (!%p486_p2)
}
   0xa   :  { %s490_s30 = scalar_lea.vmem %s39_s22, 2048  ;;  %p495_p4 = scmp.lt.s32.totalorder %s39_s22, %s39_s22 }
   0xb   :  { %p491_p3 = scmp.ne.s32.totalorder %s39_s22, %s490_s30  ;;  %p496_p5 = scmp.lt.s32.totalorder %s490_s30, %s490_s30 }
   0xd   :  { %p497_p6 = por %p496_p5, %p495_p4 }
   0xf   :  { %p498_p7 = pnand %p497_p6, %p491_p3 }
  0x11   :  { %501 = shalt.err (!%p498_p7)
}
  0x12   :  { %s587_s7 = smov 128   ;;  %s588_s8 = smov 8  }
  0x13   :  { %44 = dma.hbm_to_vmem [thread:$0]  %s708_s2, 2048, %s39_s22, [#allocation8], %s587_s7, %s587_s7, %s588_s8  }
  0x14   :  { %s502_s13 = scalar_lea.hbm %s706_s0, 16 }
  0x15   :  { %p503_p8 = scmp.ne.s32.totalorder %s706_s0, %s502_s13  ;;  %p506_p9 = scmp.lt.u32.totalorder %s502_s13, %s706_s0 }
  0x17   :  { %p508_p10 = pnand %p506_p9, %p503_p8 }
  0x19   :  { %511 = shalt.err (!%p508_p10)
}
  0x1a   :  { %s589_s18 = smov [#allocation2]   ;;  %s590_s2 = smov [#allocation6]  }
  0x1b   :  { %22 = dma.hbm_to_smem %s706_s0, 16, %s589_s18, [#allocation5]  }
  0x1c   :  { %s29_s21 = sshll.u32 %s590_s2, 4  ;;  %s591_s22 = smov [#allocation9]   ;;  %s30_s21 = int_to_ptr.vmem [resolvable:$true] %s29_s21 }
  0x1d   :  { %s52_s23 = sshll.u32 %s591_s22, 4  ;;  %s512_s26 = scalar_lea.hbm %s707_s1, 64  ;;  %s657_s23 = int_to_ptr.vmem [resolvable:$true] %s52_s23 }
  0x1e   :  { %p513_p11 = scmp.ne.s32.totalorder %s707_s1, %s512_s26  ;;  %p516_p12 = scmp.lt.u32.totalorder %s512_s26, %s707_s1 }
  0x20   :  { %p518_p13 = pnand %p516_p12, %p513_p11 }
  0x22   :  { %521 = shalt.err (!%p518_p13)
}
  0x23   :  { %s522_s0 = scalar_lea.vmem %s30_s21, 64  ;;  %p527_p1 = scmp.lt.s32.totalorder %s30_s21, %s30_s21 }
  0x24   :  { %p523_p0 = scmp.ne.s32.totalorder %s30_s21, %s522_s0  ;;  %p528_p2 = scmp.lt.s32.totalorder %s522_s0, %s522_s0 }
  0x26   :  { %p529_p3 = por %p528_p2, %p527_p1 }
  0x28   :  { %p530_p4 = pnand %p529_p3, %p523_p0 }
  0x2a   :  { %533 = shalt.err (!%p530_p4)
}
  0x2b   :  { %32 = dma.hbm_to_vmem [thread:$0]  %s707_s1, 64, %s30_s21, [#allocation3]  }
  0x2c   :  { %s534_s11 = scalar_lea.hbm %s710_s4, 1024 }
  0x2d   :  { %p535_p5 = scmp.ne.s32.totalorder %s710_s4, %s534_s11  ;;  %p538_p6 = scmp.lt.u32.totalorder %s534_s11, %s710_s4 }
  0x2f   :  { %p540_p7 = pnand %p538_p6, %p535_p5 }
  0x31   :  { %543 = shalt.err (!%p540_p7)
}
  0x32   :  { %s544_s16 = scalar_lea.vmem %s657_s23, 1024  ;;  %p549_p9 = scmp.lt.s32.totalorder %s657_s23, %s657_s23 }
  0x33   :  { %p545_p8 = scmp.ne.s32.totalorder %s657_s23, %s544_s16  ;;  %p550_p10 = scmp.lt.s32.totalorder %s544_s16, %s544_s16 }
  0x35   :  { %p551_p11 = por %p550_p10, %p549_p9 }
  0x37   :  { %p552_p12 = pnand %p551_p11, %p545_p8 }
  0x39   :  { %555 = shalt.err (!%p552_p12)
}
  0x3a   :  { %s592_s1 = smov 64   ;;  %s593_s17 = smov 4  }
  0x3b   :  { %58 = dma.hbm_to_vmem [thread:$0]  %s710_s4, 1024, %s657_s23, [#allocation8], %s592_s1, %s592_s1, %s593_s17  }
  0x3c   :  { %578 = dma.done.wait [#allocation5], 16  }
  0x3d   :  { %579 = vsyncadd [#allocation5], 4294967280 }
  0x3e   :  { %580 = dma.done.wait [#allocation3], 64  }
  0x3f   :  { %581 = vsyncadd [#allocation3], 4294967232 }
  0x40   :  { %582 = dma.done.wait [#allocation8], 3072  }
  0x41   :  { %583 = vsyncadd [#allocation8], 4294964224 }
  0x42   :  { %73 = sfence }
  0x43   :  { %v446_v0 = vld [vmem:[#allocation7 + $0x4] ss:$8 sps:$4 sm:$0xff]   ;;  %v448_v1 = vld [vmem:[#allocation7] ss:$8 sps:$4 sm:$0xff]   ;;  %v594_v2 = vmov 0   ;;  %v595_v3 = vmov 0.0   ;;  %v94_v27 = vlaneseq }
  0x44   :  { %216 = vmatprep.mubr.bf16.mxu0 %v594_v2  ;;  %414 = vmatprep.subr.bf16.mxu1 %v595_v3  ;;  %v449_v4 = vld [vmem:[#allocation7 + $0x14] ss:$8 sps:$4 sm:$0xff]   ;;  %v451_v5 = vld [vmem:[#allocation7 + $0x10] ss:$8 sps:$4 sm:$0xff]   ;;  %v452_v6 = vld [vmem:[#allocation7 + $0x24] ss:$8 sps:$4 sm:$0xff]  }
  0x45   :  { %184 = vmatprep.subr.bf16.mxu0 %v446_v0  ;;  %v454_v7 = vld [vmem:[#allocation7 + $0x20] ss:$8 sps:$4 sm:$0xff]   ;;  %v455_v8 = vld [vmem:[#allocation7 + $0x34] ss:$8 sps:$4 sm:$0xff]   ;;  %v457_v9 = vld [vmem:[#allocation7 + $0x30] ss:$8 sps:$4 sm:$0xff]  }
  0x46   :  { %185 = vmatpush1.bf16.msra.mxu0 %v448_v1  ;;  %v470_v10 = vld [vmem:[#allocation9] sm:$0xff]   ;;  %v471_v12 = vld [vmem:[#allocation9 + $0x8] sm:$0xff]   ;;  %v461_v14 = vld [vmem:[#allocation7 + $0x54] ss:$8 sps:$4 sm:$0xff]   ;;  %vm596_vm0 = vmmov 0   ;;  %v95_v28 = vshrl.u32 %v94_v27, 7 }
  0x47   :  { %186 = vmatprep.subr.bf16.mxu0 %v449_v4  ;;  %v458_v11 = vld [vmem:[#allocation7 + $0x44] ss:$8 sps:$4 sm:$0xff]   ;;  %415 = vmatpush3.bf16.msra.mxu1 %v470_v10  ;;  %v460_v13 = vld [vmem:[#allocation7 + $0x40] ss:$8 sps:$4 sm:$0xff]   ;;  %v472_v15 = vld [vmem:[#allocation9 + $0x10] sm:$0xff]   ;;  %v344_v50 = vand.u32 127, %v94_v27 }
  0x48   :  { %416 = vmatprep.subr.bf16.mxu1 %v595_v3  ;;  %v463_v16 = vld [vmem:[#allocation7 + $0x50] ss:$8 sps:$4 sm:$0xff]   ;;  %v464_v17 = vld [vmem:[#allocation7 + $0x64] ss:$8 sps:$4 sm:$0xff]   ;;  %v466_v19 = vld [vmem:[#allocation7 + $0x60] ss:$8 sps:$4 sm:$0xff]   ;;  %430 = vmatprep.mubr.msk.bf16.mxu1 %vm596_vm0, %v595_v3 }
  0x49   :  { %v473_v18 = vld [vmem:[#allocation9 + $0x18] sm:$0xff]   ;;  %v474_v21 = vld [vmem:[#allocation9 + $0x20] sm:$0xff]   ;;  %v475_v23 = vld [vmem:[#allocation9 + $0x28] sm:$0xff]   ;;  %v96_v29 = vsub.s32 0, %v95_v28  ;;  %v100_v39 = vsub.s32 1, %v95_v28  ;;  %vm345_vm1 = vcmp.lt.s32.totalorder %v344_v50, 64 }
  0x4a   :  { %187 = vmatpush1.bf16.msra.mxu0 %v451_v5  ;;  %v467_v20 = vld [vmem:[#allocation7 + $0x74] ss:$8 sps:$4 sm:$0xff]   ;;  %v469_v22 = vld [vmem:[#allocation7 + $0x70] ss:$8 sps:$4 sm:$0xff]   ;;  %s597_s22 = smov [#allocation10]  }
  0x4b   :  { %188 = vmatprep.subr.bf16.mxu0 %v452_v6  ;;  %417 = vmatpush3.bf16.msra.mxu1 %v471_v12  ;;  %v75_v24 = vld [vmem:[#allocation6] sm:$0xf]  ;;  %v476_v25 = vld [vmem:[#allocation9 + $0x30] sm:$0xff]   ;;  %s368_s23 = sshll.u32 %s597_s22, 4  ;;  %s369_s23 = int_to_ptr.vmem [resolvable:$true] %s368_s23 }
  0x4c   :  { %418 = vmatprep.subr.bf16.mxu1 %v595_v3  ;;  %v477_v26 = vld [vmem:[#allocation9 + $0x38] sm:$0xff]   ;;  %v92_v30 = vld [vmem:[%s709_s3] sm:$0x3]  ;;  %s354_s3 = sld [smem:[#allocation2]]  ;;  %s556_s24 = scalar_lea.vmem %s369_s23, 128 }
  0x4d   :  { %v97_v31 = vrot.slane %v92_v30, %v96_v29  ;;  %v395_v40 = vld [vmem:[%s711_s5] ss:$0 sm:$0xff]  ;;  %v101_v41 = vrot.slane %v92_v30, %v100_v39  ;;  %s404_s5 = sld [smem:[#allocation2 + $0x1]]  ;;  %p557_p13 = scmp.ne.s32.totalorder %s369_s23, %s556_s24 }
  0x4e   :  { %189 = vmatpush1.bf16.msra.mxu0 %v454_v7  ;;  %p561_p0 = scmp.lt.s32.totalorder %s369_s23, %s369_s23  ;;  %p562_p1 = scmp.lt.s32.totalorder %s556_s24, %s556_s24 }
  0x4f   :  { %190 = vmatprep.subr.bf16.mxu0 %v455_v8  ;;  %419 = vmatpush3.bf16.msra.mxu1 %v472_v15 }
  0x50   :  { %420 = vmatprep.subr.bf16.mxu1 %v595_v3  ;;  %p563_p2 = por %p562_p1, %p561_p0 }
  0x52   :  { %191 = vmatpush1.bf16.msra.mxu0 %v457_v9  ;;  %v357_v60 = vstv %s354_s3  ;;  %p564_p3 = pnand %p563_p2, %p557_p13 }
  0x53   :  { %192 = vmatprep.subr.bf16.mxu0 %v458_v11  ;;  %421 = vmatpush3.bf16.msra.mxu1 %v473_v18  ;;  %v359_v62 = vstv %s404_s5 }
  0x54   :  { %422 = vmatprep.subr.bf16.mxu1 %v595_v3 }
  0x56   :  { %193 = vmatpush1.bf16.msra.mxu0 %v460_v13 }
  0x57   :  { %194 = vmatprep.subr.bf16.mxu0 %v461_v14  ;;  %423 = vmatpush3.bf16.msra.mxu1 %v474_v21 }
  0x58   :  { %424 = vmatprep.subr.bf16.mxu1 %v595_v3 }
  0x5a   :  { %195 = vmatpush1.bf16.msra.mxu0 %v463_v16 }
  0x5b   :  { %196 = vmatprep.subr.bf16.mxu0 %v464_v17  ;;  %425 = vmatpush3.bf16.msra.mxu1 %v475_v23 }
  0x5c   :  { %426 = vmatprep.subr.bf16.mxu1 %v595_v3 }
  0x5e   :  { %197 = vmatpush1.bf16.msra.mxu0 %v466_v19 }
  0x5f   :  { %198 = vmatprep.subr.bf16.mxu0 %v467_v20  ;;  %427 = vmatpush3.bf16.msra.mxu1 %v476_v25 }
  0x60   :  { %428 = vmatprep.subr.bf16.mxu1 %v595_v3 }
  0x62   :  { %199 = vmatpush1.bf16.msra.mxu0 %v469_v22 }
  0x63   :  { %429 = vmatpush3.bf16.msra.mxu1 %v477_v26 }
  0x65   :  { %217 = vmatmul.mubr.bf16.vlgmr.msra.gmra.mrb[0].mxu0 %v75_v24 }
 0x138   :  { %v218_v32 = vpop.f32.mrb[0].mxu0 }
 0x139   :  { %v219_v33 = vadd.f32 %v218_v32, %v97_v31  ;;  %v220_v34 = vpop.f32.mrb[1].mxu0 }
 0x13a   :  { %v222_v35 = vpop.f32.mrb[2].mxu0  ;;  %v221_v46 = vadd.f32 %v220_v34, %v101_v41 }
 0x13b   :  { %v225_v36 = vmax.f32 %v219_v33, 0.0  ;;  %v223_v37 = vpop.f32.mrb[3].mxu0 }
 0x13d   :  { %v226_v38 = vpack.c.bf16 %v225_v36, %v225_v36 }
 0x13f   :  { %431 = vmatmul.mubr.bf16.vlgmr.msra.gmra.mrb[0].mxu1 %v226_v38 }
 0x212   :  { %v332_v42 = vpop.f32.mrb[0].mxu1 }
 0x213   :  { %v333_v43 = vadd.f32 %v395_v40, %v332_v42  ;;  %v432_v44 = vpop.f32.mrb[1].mxu1 }
 0x214   :  { %v335_v45 = vpop.f32.mrb[2].mxu1 }
 0x215   :  { %v338_v47 = vmax.f32 %v333_v43, 0.0  ;;  %v433_v48 = vpop.f32.mrb[3].mxu1 }
 0x217   :  { %v339_v49 = vadd.f32 %v338_v47, %v221_v46 }
 0x219   :  { %340 = vadd.xlane.f32.xlu0 %v339_v49 }
 0x2a6   :  { %v341_v51 = vpop.xlane.xlu0 %340 }
 0x2a7   :  { %v342_v52 = vmul.f32 0.015625, %v341_v51 }
 0x2a9   :  { %v346_v53 = vsub.f32 %v339_v49, %v342_v52 }
 0x2ab   :  { %v347_v54 = vsel %vm345_vm1, %v346_v53, 0.0 }
 0x2ac   :  { %v348_v55 = vmul.f32 %v347_v54, %v347_v54 }
 0x2ae   :  { %349 = vadd.xlane.f32.xlu0 %v348_v55 }
 0x33b   :  { %v350_v56 = vpop.xlane.xlu0 %349 }
 0x33c   :  { %v351_v57 = vmul.f32 0.015873017, %v350_v56 }
 0x33e   :  { %v352_v58 = vadd.f32 1e-05, %v351_v57 }
 0x340   :  { %478 = vrsqrt.f32 %v352_v58 }
 0x34a   :  { %v479_v59 = vpop.eup %478 }
 0x34b   :  { %v356_v61 = vmul.f32 %v479_v59, %v347_v54 }
 0x34d   :  { %v358_v63 = vmul.f32 %v357_v60, %v356_v61 }
 0x34f   :  { %v360_v0 = vadd.f32 %v359_v62, %v358_v63 }
 0x351   :  { %361 = vst [vmem:[#allocation10] sm:$0xff] %v360_v0 }
 0x352   :  { %567 = shalt.err (!%p564_p3)
}
 0x353   :  { %s568_s27 = scalar_lea.hbm %s712_s6, 128 }
 0x354   :  { %p569_p4 = scmp.ne.s32.totalorder %s712_s6, %s568_s27  ;;  %p572_p5 = scmp.lt.u32.totalorder %s568_s27, %s712_s6 }
 0x356   :  { %p574_p6 = pnand %p572_p5, %p569_p4 }
 0x358   :  { %577 = shalt.err (!%p574_p6)
}
 0x359   :  { %371 = dma.vmem_to_hbm [thread:$0]  %s369_s23, 128, %s712_s6, [#allocation4]  }
 0x35a   :  { %584 = dma.done.wait [#allocation4], 128  }
 0x35b   :  { %585 = vsyncadd [#allocation4], 4294967168 }
 0x35c   :  { %375 = vsyncpa [#allocation3], 1 }
 0x35d   :  { %376 = vsyncpa [#allocation8], 1 }
 0x35e   :  { %377 = vsyncpa [#allocation4], 1 }
 0x35f   :  { %378 = vsyncpa [#allocation5], 1 }

</bundles_post_ra>
